<compile_context>
chip_gen: v6e
topology: v6e:2x2x1
jax: 0.10.0
libtpu: 0.0.40
codegen_flags: <defaults>
</compile_context>

<pallas_src>
import functools

import jax
import jax.numpy as jnp
from jax.experimental import pallas as pl
from jax.experimental.pallas import tpu as pltpu


# ----------------------------------------------------------------------------
# Faithful JAX ports of the PyTorch transform helpers.  Used (a) once to build
# the projection matrix and (b) as the pure-JAX correctness reference.
# ----------------------------------------------------------------------------
def wswa(u):
    return jnp.fft.rfft(u, axis=-1)


def iwswa(a, n=None):
    N_out = n if n is not None else ((a.shape[-1] - 1) * 2 if a.shape[-1] > 0 else 0)
    if N_out == 0 and a.shape[-1] == 1:
        N_out = 1
    return jnp.fft.irfft(a, n=N_out, axis=-1)


def cos_transform(u):
    Nx = u.shape[-1]
    if Nx < 2:
        return u
    V = jnp.concatenate([u, jnp.flip(u[..., 1:Nx - 1], axis=-1)], axis=-1)
    return jnp.fft.rfft(V, axis=-1).real / (Nx - 1.0 if Nx > 1 else 1.0)


def icos_transform(a, n=None):
    Nx_coeffs = a.shape[-1]
    N_out = n if n is not None else Nx_coeffs
    if N_out < 1:
        return jnp.zeros(a.shape[:-1] + (N_out,), a.dtype)
    if N_out == 1:
        return a[..., :1]
    L = 2 * (N_out - 1)
    coeffs = min(Nx_coeffs, N_out)
    fr = jnp.zeros(a.shape[:-1] + (L,), jnp.float32)
    fr = fr.at[..., :coeffs].set(a[..., :coeffs])
    fr = fr.at[..., N_out:].set(jnp.flip(a[..., 1:min(coeffs, N_out - 1)], axis=-1))
    fr = fr * ((N_out - 1.0) / 2.0)
    fr = fr.at[..., 0].multiply(2.0)
    fr = fr.at[..., N_out - 1].multiply(2.0)
    u_full = jnp.fft.ifft(fr.astype(jnp.complex64), axis=-1).real
    return u_full[..., :N_out]


def sin_transform(u):
    Nx = u.shape[-1]
    V = jnp.concatenate([u, -jnp.flip(u, axis=-1)[..., 1:Nx - 1]], axis=-1)
    return -jnp.fft.fft(V, axis=-1)[..., :Nx].imag / (Nx - 1)


def isin_transform(a, n=None):
    Nx_coeffs = a.shape[-1]
    N_out = n if n is not None else Nx_coeffs
    L = 2 * (N_out - 1)
    if L <= 0:
        return jnp.zeros(a.shape[:-1] + (N_out,), jnp.float32)
    V_imag = jnp.zeros(a.shape[:-1] + (L,), jnp.float32)
    limit = min(Nx_coeffs, N_out)
    V_imag = V_imag.at[..., 1:limit].set(a[..., 1:limit])
    if N_out > 1:
        V_imag = V_imag.at[..., N_out:].set(-jnp.flip(a[..., 1:limit - 1], axis=-1))
    V_complex = jax.lax.complex(jnp.zeros_like(V_imag), -V_imag)
    return jnp.fft.ifft(V_complex, axis=-1)[..., :N_out].real * (L * 0.5)


_TRANSFORMS = {
    "dirichlet": (sin_transform, isin_transform),
    "neumann": (cos_transform, icos_transform),
    "mixed": (wswa, iwswa),
}


def projection_filter_reference(x, transform_type="dirichlet"):
    """Pure-JAX mirror of ProjectionFilter1d.forward."""
    if transform_type not in _TRANSFORMS:
        return x
    fwd, inv = _TRANSFORMS[transform_type]
    N = x.shape[-1]
    return inv(fwd(x), n=N)


def build_projection_matrix(transform_type, N):
    """(N, N) real matrix P such that forward(x) == x @ P (forward is linear)."""
    eye = jnp.eye(N, dtype=jnp.float32)
    return projection_filter_reference(eye, transform_type).astype(jnp.float32)


def _diagonal_of(P, rel_tol=1e-5):
    """Classify P once (host side).  Returns (is_diagonal, diag)."""
    d = jnp.diagonal(P)
    off = jnp.max(jnp.abs(P - jnp.diag(d)))
    scale = jnp.maximum(jnp.max(jnp.abs(P)), 1.0)
    return bool(off <= rel_tol * scale), d


# ----------------------------------------------------------------------------
# Pallas kernels.
# ----------------------------------------------------------------------------
def _diag_scale_kernel(x_ref, d_ref, o_ref):
    # x_ref: (TM, N), d_ref: (1, N) f32, o_ref: (TM, N).  Pure VPU, HBM-bound.
    o_ref[...] = (x_ref[...].astype(jnp.float32) * d_ref[...]).astype(o_ref.dtype)


def _matmul_kernel(x_ref, p_ref, o_ref, *, precision):
    # x_ref: (TM, K), p_ref: (K, TN), o_ref: (TM, TN).  One MXU matmul per tile,
    # f32 accumulation; TN sits on the lane axis.
    o_ref[...] = jax.lax.dot_general(
        x_ref[...], p_ref[...],
        dimension_numbers=(((1,), (0,)), ((), ())),
        preferred_element_type=jnp.float32,
        precision=precision,
    ).astype(o_ref.dtype)


# ----------------------------------------------------------------------------
# Tiling helpers and wrappers.
# ----------------------------------------------------------------------------
_VMEM_BUDGET = 44 * 1024 * 1024   # conservative: leaves headroom under v7x's 64 MiB


def _round_up(a, m):
    return ((a + m - 1) // m) * m


def _sublane(dtype):
    # f32 -> 8, bf16 -> 16, int8/fp8 -> 32 (packed sublane multiples).
    return max(8, 32 // jnp.dtype(dtype).itemsize)


def _pick_row_tile(R, max_tile, sub):
    if R <= sub:
        return R                                    # full-extent block, always legal
    # >= 2 row tiles so ("parallel", ...) can shard across both v7x TensorCores
    # even for small batch*channel counts.  Large tiles amortize grid overhead.
    half = _round_up(-(-R // 2), sub)
    return max(sub, min(max_tile, half))


def _vmem_limit(need_bytes):
    return int(min(60 * 2 ** 20, max(32 * 2 ** 20, need_bytes + 8 * 2 ** 20)))


@jax.jit
def _apply_diag(x2d, d_row):
    """y = x2d * diag, row-tiled; ragged last block handled by Pallas (no pad)."""
    R, N = x2d.shape
    xb = ob = x2d.dtype.itemsize
    sub = _sublane(x2d.dtype)
    tm = _pick_row_tile(R, 1024, sub)
    need = lambda tm_: 2 * tm_ * N * (xb + ob) + 2 * N * 4
    while need(tm) > _VMEM_BUDGET and tm > sub:
        tm = max(sub, _round_up(tm // 2, sub))
    return pl.pallas_call(
        _diag_scale_kernel,
        out_shape=jax.ShapeDtypeStruct((R, N), x2d.dtype),
        grid=(pl.cdiv(R, tm),),
        in_specs=[
            pl.BlockSpec((tm, N), lambda i: (i, 0)),     # activations, row tiles
            pl.BlockSpec((1, N), lambda i: (0, 0)),      # diagonal, resident
        ],
        out_specs=pl.BlockSpec((tm, N), lambda i: (i, 0)),
        compiler_params=pltpu.CompilerParams(
            dimension_semantics=("parallel",),
            vmem_limit_bytes=_vmem_limit(need(tm)),
        ),
        cost_estimate=pl.CostEstimate(
            flops=R * N, transcendentals=0,
            bytes_accessed=(xb + ob) * R * N + 4 * N),
    )(x2d, d_row)


@jax.jit
def _apply_dense(x2d, P):
    """y = x2d @ P via a row x out-column tiled MXU matmul."""
    R, K = x2d.shape
    Nout = P.shape[-1]
    xb = ob = x2d.dtype.itemsize
    pb = P.dtype.itemsize
    sub = _sublane(x2d.dtype)

    tm = _pick_row_tile(R, 512, sub)
    tn = Nout
    need = lambda tm_, tn_: (2 * tm_ * K * xb + 2 * K * tn_ * pb + 2 * tm_ * tn_ * ob)
    # Column-tile P once the (K, Nout) weight no longer fits the VMEM budget
    # (mandatory on v7x around N ~ 2k f32).  Column tiles are multiples of 128
    # so stores stay lane-dense; the ragged last strip is masked by Pallas.
    while need(tm, tn) > _VMEM_BUDGET and tn > 128:
        tn = _round_up(tn // 2, 128)
    while need(tm, tn) > _VMEM_BUDGET and tm > sub:
        tm = max(sub, _round_up(tm // 2, sub))

    # f32 inputs: exact f32 matmul (multi-pass MXU); bf16 inputs: native bf16 MXU.
    precision = (jax.lax.Precision.HIGHEST if x2d.dtype == jnp.float32
                 else jax.lax.Precision.DEFAULT)

    # Grid order: column strips outer, row tiles inner -> each P strip is DMA'd
    # once (single column strip => P is fetched exactly once) while x row tiles
    # stream.  No pad/slice of x or out in HBM: pl.cdiv grids + masked writeback.
    grid = (pl.cdiv(Nout, tn), pl.cdiv(R, tm))
    return pl.pallas_call(
        functools.partial(_matmul_kernel, precision=precision),
        out_shape=jax.ShapeDtypeStruct((R, Nout), x2d.dtype),
        grid=grid,
        in_specs=[
            pl.BlockSpec((tm, K), lambda j, i: (i, 0)),   # activations
            pl.BlockSpec((K, tn), lambda j, i: (0, j)),   # projection matrix strip
        ],
        out_specs=pl.BlockSpec((tm, tn), lambda j, i: (i, j)),
        compiler_params=pltpu.CompilerParams(
            dimension_semantics=("parallel", "parallel"),
            vmem_limit_bytes=_vmem_limit(need(tm, tn)),
        ),
        cost_estimate=pl.CostEstimate(
            flops=2 * R * K * Nout, transcendentals=0,
            bytes_accessed=xb * R * K + pb * K * Nout + ob * R * Nout),
    )(x2d, P)


def projection_filter_forward(x, op):
    """ProjectionFilter1d.forward using the precomputed/classified projection."""
    kind, mat = op
    N = x.shape[-1]
    x2d = x.reshape(-1, N)                    # contiguous reshape, no transpose
    if kind == "diag":
        out2d = _apply_diag(x2d, mat)
    else:
        out2d = _apply_dense(x2d, mat.astype(x.dtype))   # bf16 in -> bf16 weights
    return out2d.reshape(x.shape)


class ProjectionFilter1d:
    """Mirrors the PyTorch module: builds & classifies the projection once per N."""

    def __init__(self, transform_type="dirichlet", allow_diagonal_fast_path=True):
        self.transform_type = transform_type
        self.allow_diagonal_fast_path = allow_diagonal_fast_path
        self._cache = {}

    def _get_op(self, N):
        if N not in self._cache:
            P = build_projection_matrix(self.transform_type, N)
            is_diag, d = (False, None)
            if self.allow_diagonal_fast_path:
                is_diag, d = _diagonal_of(P)
            if is_diag:
                self._cache[N] = ("diag", d.reshape(1, N).astype(jnp.float32))
            else:
                self._cache[N] = ("dense", P)
        return self._cache[N]

    def __call__(self, x):
        if self.transform_type not in _TRANSFORMS:
            return x                          # identity, as in the PyTorch module
        return projection_filter_forward(x, self._get_op(x.shape[-1]))


if __name__ == "__main__":
    key = jax.random.PRNGKey(0)

    # Small smoke test at module-typical shapes (diagonal fast path).
    B, C, N = 2, 4, 16
    x = jax.random.normal(key, (B, C, N), dtype=jnp.float32)
    for ttype in ("dirichlet", "neumann", "mixed", "periodic"):
        filt = ProjectionFilter1d(ttype)
        out = jax.block_until_ready(filt(x))
        ref = projection_filter_reference(x, ttype)
        assert out.shape == x.shape and out.dtype == x.dtype
        assert jnp.allclose(out, ref, atol=1e-4, rtol=1e-4), f"mismatch ({ttype})"

    # Force the dense MXU fallback path (diagonal short-circuit disabled).
    filt_dense = ProjectionFilter1d("dirichlet", allow_diagonal_fast_path=False)
    out = jax.block_until_ready(filt_dense(x))
    ref = projection_filter_reference(x, "dirichlet")
    assert jnp.allclose(out, ref, atol=1e-4, rtol=1e-4), "mismatch (dense small)"

    # Multi-tile, ragged-row (R=21 -> 2 row tiles), lane-aligned (N=128) case,
    # through both the diagonal and the dense paths.
    B2, C2, N2 = 3, 7, 128
    x2 = jax.random.normal(jax.random.PRNGKey(1), (B2, C2, N2), dtype=jnp.float32)
    ref2 = projection_filter_reference(x2, "dirichlet")
    for fast in (True, False):
        filt2 = ProjectionFilter1d("dirichlet", allow_diagonal_fast_path=fast)
        out2 = jax.block_until_ready(filt2(x2))
        assert jnp.allclose(out2, ref2, atol=1e-3, rtol=1e-3), f"mismatch (128, fast={fast})"

    # bf16 path preserves the caller dtype.
    x_bf16 = x2.astype(jnp.bfloat16)
    out_bf = jax.block_until_ready(ProjectionFilter1d("dirichlet")(x_bf16))
    assert out_bf.dtype == jnp.bfloat16
    ref_bf = projection_filter_reference(x_bf16.astype(jnp.float32), "dirichlet")
    assert jnp.allclose(out_bf.astype(jnp.float32), ref_bf, atol=2e-2, rtol=2e-2)

    print("KERNEL_OK")
</pallas_src>

<mosaic_0001>
module attributes {stable_mosaic.version = 11 : i64} {
  func.func @_diag_scale_kernel(%arg0: i32, %arg1: memref<8x16xf32, #tpu.memory_space<vmem>>, %arg2: memref<1x16xf32, #tpu.memory_space<vmem>>, %arg3: memref<8x16xf32, #tpu.memory_space<vmem>>) attributes {dimension_semantics = [#tpu.dimension_semantics<parallel>], iteration_bounds = array<i64: 1>, scalar_prefetch = 0 : i64, scratch_operands = 0 : i64, tpu.core_type = #tpu.core_type<tc>, window_params = [{transform_indices = @transform_0, window_bounds = array<i64: 8, 16>}, {pipeline_mode = #tpu.pipeline_mode<synchronous>, transform_indices = @transform_1, window_bounds = array<i64: 1, 16>}, {transform_indices = @transform_2, window_bounds = array<i64: 8, 16>}]} {
    %c0 = arith.constant 0 : index
    %c0_0 = arith.constant 0 : index
    %0 = vector.load %arg1[%c0, %c0_0] : memref<8x16xf32, #tpu.memory_space<vmem>>, vector<8x16xf32>
    %c0_1 = arith.constant 0 : index
    %c0_2 = arith.constant 0 : index
    %1 = vector.load %arg2[%c0_1, %c0_2] : memref<1x16xf32, #tpu.memory_space<vmem>>, vector<1x16xf32>
    %2 = vector.broadcast %1 : vector<1x16xf32> to vector<8x16xf32>
    %3 = arith.mulf %0, %2 : vector<8x16xf32>
    %c0_3 = arith.constant 0 : index
    %c0_4 = arith.constant 0 : index
    %4 = vector.load %arg3[%c0_3, %c0_4] : memref<8x16xf32, #tpu.memory_space<vmem>>, vector<8x16xf32>
    tpu.vector_store %arg3[%c0_3, %c0_4], %3 {strides = array<i32>} : memref<8x16xf32, #tpu.memory_space<vmem>>, vector<8x16xf32>,
    return
  }
  func.func @transform_0(%arg0: i32) -> (i32, i32) {
    %c0_i32 = arith.constant 0 : i32
    %c0_i32_0 = arith.constant 0 : i32
    return %arg0, %c0_i32 : i32, i32
  }
  func.func @transform_1(%arg0: i32) -> (i32, i32) {
    %c0_i32 = arith.constant 0 : i32
    %c0_i32_0 = arith.constant 0 : i32
    %c0_i32_1 = arith.constant 0 : i32
    return %c0_i32, %c0_i32_0 : i32, i32
  }
  func.func @transform_2(%arg0: i32) -> (i32, i32) {
    %c0_i32 = arith.constant 0 : i32
    %c0_i32_0 = arith.constant 0 : i32
    return %arg0, %c0_i32 : i32, i32
  }
}

</mosaic_0001>

<bundles_post_ra>
// kernel: _apply_diag.1
= control target key start
LH: loop header
LB: loop body
LE: loop exit
PB: predicated region body
PF: predicated region fallthrough
CT: control target
= control target key end

     0   :  { %7 = vsyncpa [#allocation3], 0  ;;  %s123_s0 = inlined_call_operand.hbm [shape: f32[8,16], index: 0, kind: input, shape index: {}]   ;;  %s124_s1 = inlined_call_operand.vmem [shape: f32[1,16], index: 1, kind: input, shape index: {}]   ;;  %s125_s2 = inlined_call_operand.hbm [shape: f32[8,16], index: 2, kind: output, shape index: {}]  }
   0x1   :  { %8 = vsyncpa [#allocation4], 0  ;;  %s97_s9 = smov [#allocation2]  }
   0x2   :  { %s15_s10 = sshll.u32 %s97_s9, 4  ;;  %s16_s10 = int_to_ptr.vmem [resolvable:$true] %s15_s10 }
   0x3   :  { %s61_s11 = scalar_lea.vmem %s16_s10, 128  ;;  %p66_p1 = scmp.lt.s32.totalorder %s16_s10, %s16_s10 }
   0x4   :  { %p62_p0 = scmp.ne.s32.totalorder %s16_s10, %s61_s11  ;;  %p67_p2 = scmp.lt.s32.totalorder %s61_s11, %s61_s11 }
   0x6   :  { %p68_p3 = por %p67_p2, %p66_p1 }
   0x8   :  { %p69_p4 = pnand %p68_p3, %p62_p0 }
   0xa   :  { %72 = shalt.err (!%p69_p4)
}
   0xb   :  { %18 = dma.hbm_to_vmem [thread:$0]  %s123_s0, 128, %s16_s10, [#allocation3]  }
   0xc   :  { %93 = dma.done.wait [#allocation3], 128  }
   0xd   :  { %94 = vsyncadd [#allocation3], 4294967168  ;;  %s98_s14 = smov [#allocation5]   ;;  %v24_v0 = vld [vmem:[#allocation2] sm:$0xff]  ;;  %vm33_vm0 = vcmask 130048  }
   0xe   :  { %s41_s15 = sshll.u32 %s98_s14, 4  ;;  %v50_v1 = vld [vmem:[%s124_s1] ss:$0 sm:$0xff]  ;;  %s42_s15 = int_to_ptr.vmem [resolvable:$true] %s41_s15 }
   0xf   :  { %v32_v2 = vmul.f32 %v50_v1, %v24_v0  ;;  %s73_s18 = scalar_lea.vmem %s42_s15, 128  ;;  %p78_p6 = scmp.lt.s32.totalorder %s42_s15, %s42_s15 }
  0x10   :  { %p74_p5 = scmp.ne.s32.totalorder %s42_s15, %s73_s18  ;;  %p79_p7 = scmp.lt.s32.totalorder %s73_s18, %s73_s18 }
  0x11   :  { %34 = vst.msk [vmem:[#allocation5] sm:$0xff] %vm33_vm0, %v32_v2 }
  0x12   :  { %p80_p8 = por %p79_p7, %p78_p6 }
  0x14   :  { %p81_p9 = pnand %p80_p8, %p74_p5 }
  0x16   :  { %84 = shalt.err (!%p81_p9)
}
  0x17   :  { %44 = dma.vmem_to_hbm [thread:$0]  %s42_s15, 128, %s125_s2, [#allocation4]  }
  0x18   :  { %95 = dma.done.wait [#allocation4], 128  }
  0x19   :  { %96 = vsyncadd [#allocation4], 4294967168 }
  0x1a   :  { %48 = vsyncpa [#allocation3], 1 }
  0x1b   :  { %49 = vsyncpa [#allocation4], 1 }

</bundles_post_ra>
